<compile_context>
chip_gen: v6e
topology: v6e:2x2x1
jax: 0.10.0
libtpu: 0.0.40
codegen_flags: <defaults>
</compile_context>

<pallas_src>
import functools

import jax
import jax.numpy as jnp
from jax import lax
from jax.experimental import pallas as pl
from jax.experimental.pallas import tpu as pltpu


D_IN, D_H1, D_H2, D_H3, D_OUT = 7, 20, 30, 10, 2


def _round_up(n, m):
    return ((n + m - 1) // m) * m


def mlp_kernel(x_ref,
               w1_ref, b1_ref,
               w2_ref, b2_ref,
               w3_ref, b3_ref,
               w4_ref, b4_ref,
               out_ref):
    """One batch tile. x_ref: [TB, 7] (native layout); out_ref: [2, TB]."""
    x = x_ref[...]

    # linear1 + ReLU.  Contract x's minor (feature) dim directly:
    #   [20, 7] x [TB, 7] -> [20, TB]   (i.e. W1 @ x.T, RHS fed transposed)
    # keeping activations feature-major (batch on lanes) without an explicit
    # transpose of x and without any wrapper-side relayout of x in HBM.
    h1 = lax.dot_general(
        w1_ref[...], x,
        dimension_numbers=(((1,), (1,)), ((), ())),
        preferred_element_type=jnp.float32) + b1_ref[...]
    h1 = jnp.maximum(h1, 0.0)

    # linear2 + ReLU : [30,20] @ [20,TB] + [30,1]
    h2 = jnp.dot(w2_ref[...], h1.astype(w2_ref.dtype),
                 preferred_element_type=jnp.float32) + b2_ref[...]
    h2 = jnp.maximum(h2, 0.0)

    # linear3 + ReLU : [10,30] @ [30,TB] + [10,1]
    h3 = jnp.dot(w3_ref[...], h2.astype(w3_ref.dtype),
                 preferred_element_type=jnp.float32) + b3_ref[...]
    h3 = jnp.maximum(h3, 0.0)

    # linear4 (no activation) : [2,10] @ [10,TB] + [2,1]
    z = jnp.dot(w4_ref[...], h3.astype(w4_ref.dtype),
                preferred_element_type=jnp.float32) + b4_ref[...]

    out_ref[...] = z.astype(out_ref.dtype)


def _choose_batch_tile(batch, block_batch):
    if batch <= 128:
        # Single full-extent block (block dims == array dims): always legal,
        # no edge masking needed for tiny inputs.
        return batch
    tb = _round_up(min(block_batch, batch), 128)          # lane-aligned tile
    if pl.cdiv(batch, tb) < 2 and batch > 256:
        # Ensure >= 2 grid steps so the "parallel" batch axis can be sharded
        # across both TensorCores on v7x (harmless on v5e/v6e).
        tb = _round_up(pl.cdiv(batch, 2), 128)
    return tb


@functools.partial(jax.jit, static_argnames=("block_batch", "use_bf16"))
def mlp_forward(x, params, *, block_batch=4096, use_bf16=False):
    """x: [B, 7] float32 -> [B, 2] float32 (PyTorch MLP.forward semantics).

    params: ((w1,b1),(w2,b2),(w3,b3),(w4,b4)) with w_i in PyTorch layout
    [out_features, in_features] and b_i of shape [out_features].
    """
    (w1, b1), (w2, b2), (w3, b3), (w4, b4) = params
    batch = x.shape[0]
    assert x.shape[1] == D_IN

    if use_bf16:
        # Halves MXU pushes and x HBM bytes; accumulation stays fp32.
        # Results differ from the fp32 reference at ~1e-3, so gated off by
        # default.
        x = x.astype(jnp.bfloat16)
        w1, w2, w3, w4 = (w.astype(jnp.bfloat16) for w in (w1, w2, w3, w4))

    tb = _choose_batch_tile(batch, block_batch)
    grid = (pl.cdiv(batch, tb),)

    # Biases broadcast along lanes (kept fp32 in all modes).
    b1c = b1.reshape(D_H1, 1).astype(jnp.float32)
    b2c = b2.reshape(D_H2, 1).astype(jnp.float32)
    b3c = b3.reshape(D_H3, 1).astype(jnp.float32)
    b4c = b4.reshape(D_OUT, 1).astype(jnp.float32)

    # Constant block index => DMA'd once, stays VMEM-resident across the grid.
    resident = lambda a: pl.BlockSpec(a.shape, lambda i: (0, 0))

    out_t = pl.pallas_call(
        mlp_kernel,
        out_shape=jax.ShapeDtypeStruct((D_OUT, batch), jnp.float32),
        grid=grid,
        in_specs=[
            pl.BlockSpec((tb, D_IN), lambda i: (i, 0)),   # x streams over batch
            resident(w1), resident(b1c),
            resident(w2), resident(b2c),
            resident(w3), resident(b3c),
            resident(w4), resident(b4c),
        ],
        out_specs=pl.BlockSpec((D_OUT, tb), lambda i: (0, i)),  # lane-dense
        compiler_params=pltpu.CompilerParams(
            dimension_semantics=("parallel",),
        ),
    )(x, w1, b1c, w2, b2c, w3, b3c, w4, b4c)

    # Back to PyTorch layout [B, 2] (cheap: 8 B/elem on the tiny output).
    return out_t.T


def init_linear(key, in_features, out_features):
    """nn.Linear-style init U(-1/sqrt(fan_in), 1/sqrt(fan_in)).
    Weight stored in PyTorch layout [out_features, in_features]."""
    k_w, k_b = jax.random.split(key)
    bound = 1.0 / jnp.sqrt(jnp.float32(in_features))
    w = jax.random.uniform(k_w, (out_features, in_features),
                           minval=-bound, maxval=bound, dtype=jnp.float32)
    b = jax.random.uniform(k_b, (out_features,),
                           minval=-bound, maxval=bound, dtype=jnp.float32)
    return w, b


def reference_forward(x, params):
    (w1, b1), (w2, b2), (w3, b3), (w4, b4) = params
    h = jnp.maximum(x @ w1.T + b1, 0.0)
    h = jnp.maximum(h @ w2.T + b2, 0.0)
    h = jnp.maximum(h @ w3.T + b3, 0.0)
    return h @ w4.T + b4


if __name__ == "__main__":
    key = jax.random.PRNGKey(0)
    k_x, k_x2, k1, k2, k3, k4 = jax.random.split(key, 6)

    params = (
        init_linear(k1, D_IN, D_H1),
        init_linear(k2, D_H1, D_H2),
        init_linear(k3, D_H2, D_H3),
        init_linear(k4, D_H3, D_OUT),
    )

    # Small primary check (single full-extent block).
    batch = 8
    x = jax.random.normal(k_x, (batch, D_IN), dtype=jnp.float32)
    out = jax.block_until_ready(mlp_forward(x, params))
    ref = reference_forward(x, params)
    assert out.shape == (batch, D_OUT), out.shape
    assert jnp.allclose(out, ref, atol=1e-5, rtol=1e-5), "mismatch vs reference"

    # Secondary check: multi-step grid with a ragged last tile (exercises the
    # clipped edge-block path used at production batch sizes).
    batch2 = 300
    x2 = jax.random.normal(k_x2, (batch2, D_IN), dtype=jnp.float32)
    out2 = jax.block_until_ready(mlp_forward(x2, params))
    ref2 = reference_forward(x2, params)
    assert out2.shape == (batch2, D_OUT), out2.shape
    assert jnp.allclose(out2, ref2, atol=1e-5, rtol=1e-5), "mismatch vs reference (ragged)"

    print("KERNEL_OK")
</pallas_src>

<mosaic_0001>
module attributes {stable_mosaic.version = 11 : i64} {
  func.func @mlp_kernel(%arg0: i32, %arg1: memref<8x7xf32, #tpu.memory_space<vmem>>, %arg2: memref<20x7xf32, #tpu.memory_space<vmem>>, %arg3: memref<20x1xf32, #tpu.memory_space<vmem>>, %arg4: memref<30x20xf32, #tpu.memory_space<vmem>>, %arg5: memref<30x1xf32, #tpu.memory_space<vmem>>, %arg6: memref<10x30xf32, #tpu.memory_space<vmem>>, %arg7: memref<10x1xf32, #tpu.memory_space<vmem>>, %arg8: memref<2x10xf32, #tpu.memory_space<vmem>>, %arg9: memref<2x1xf32, #tpu.memory_space<vmem>>, %arg10: memref<2x8xf32, #tpu.memory_space<vmem>>) attributes {dimension_semantics = [#tpu.dimension_semantics<parallel>], iteration_bounds = array<i64: 1>, scalar_prefetch = 0 : i64, scratch_operands = 0 : i64, tpu.core_type = #tpu.core_type<tc>, window_params = [{transform_indices = @transform_0, window_bounds = array<i64: 8, 7>}, {pipeline_mode = #tpu.pipeline_mode<synchronous>, transform_indices = @transform_1, window_bounds = array<i64: 20, 7>}, {pipeline_mode = #tpu.pipeline_mode<synchronous>, transform_indices = @transform_2, window_bounds = array<i64: 20, 1>}, {pipeline_mode = #tpu.pipeline_mode<synchronous>, transform_indices = @transform_3, window_bounds = array<i64: 30, 20>}, {pipeline_mode = #tpu.pipeline_mode<synchronous>, transform_indices = @transform_4, window_bounds = array<i64: 30, 1>}, {pipeline_mode = #tpu.pipeline_mode<synchronous>, transform_indices = @transform_5, window_bounds = array<i64: 10, 30>}, {pipeline_mode = #tpu.pipeline_mode<synchronous>, transform_indices = @transform_6, window_bounds = array<i64: 10, 1>}, {pipeline_mode = #tpu.pipeline_mode<synchronous>, transform_indices = @transform_7, window_bounds = array<i64: 2, 10>}, {pipeline_mode = #tpu.pipeline_mode<synchronous>, transform_indices = @transform_8, window_bounds = array<i64: 2, 1>}, {transform_indices = @transform_9, window_bounds = array<i64: 2, 8>}]} {
    %c0 = arith.constant 0 : index
    %c0_0 = arith.constant 0 : index
    %0 = vector.load %arg1[%c0, %c0_0] : memref<8x7xf32, #tpu.memory_space<vmem>>, vector<8x7xf32>
    %c0_1 = arith.constant 0 : index
    %c0_2 = arith.constant 0 : index
    %1 = vector.load %arg2[%c0_1, %c0_2] : memref<20x7xf32, #tpu.memory_space<vmem>>, vector<20x7xf32>
    %cst = arith.constant dense<0.000000e+00> : vector<20x8xf32>
    %2 = tpu.matmul %1, %0, %cst {dimension_numbers = #tpu.dot_dimension_numbers<[1], [1], [0], [0], [0, 0, 1, 0], [], []>} : vector<20x7xf32>, vector<8x7xf32>, vector<20x8xf32> -> vector<20x8xf32>
    %c0_3 = arith.constant 0 : index
    %c0_4 = arith.constant 0 : index
    %3 = vector.load %arg3[%c0_3, %c0_4] : memref<20x1xf32, #tpu.memory_space<vmem>>, vector<20x1xf32>
    %4 = vector.broadcast %3 : vector<20x1xf32> to vector<20x8xf32>
    %5 = arith.addf %2, %4 : vector<20x8xf32>
    %cst_5 = arith.constant 0.000000e+00 : f32
    %6 = vector.broadcast %cst_5 : f32 to vector<20x8xf32>
    %7 = arith.maximumf %5, %6 : vector<20x8xf32>
    %c0_6 = arith.constant 0 : index
    %c0_7 = arith.constant 0 : index
    %8 = vector.load %arg4[%c0_6, %c0_7] : memref<30x20xf32, #tpu.memory_space<vmem>>, vector<30x20xf32>
    %cst_8 = arith.constant dense<0.000000e+00> : vector<30x8xf32>
    %9 = tpu.matmul %8, %7, %cst_8 {dimension_numbers = #tpu.dot_dimension_numbers<[1], [0], [0], [1], [0, 0, 1, 1], [], []>} : vector<30x20xf32>, vector<20x8xf32>, vector<30x8xf32> -> vector<30x8xf32>
    %c0_9 = arith.constant 0 : index
    %c0_10 = arith.constant 0 : index
    %10 = vector.load %arg5[%c0_9, %c0_10] : memref<30x1xf32, #tpu.memory_space<vmem>>, vector<30x1xf32>
    %11 = vector.broadcast %10 : vector<30x1xf32> to vector<30x8xf32>
    %12 = arith.addf %9, %11 : vector<30x8xf32>
    %cst_11 = arith.constant 0.000000e+00 : f32
    %13 = vector.broadcast %cst_11 : f32 to vector<30x8xf32>
    %14 = arith.maximumf %12, %13 : vector<30x8xf32>
    %c0_12 = arith.constant 0 : index
    %c0_13 = arith.constant 0 : index
    %15 = vector.load %arg6[%c0_12, %c0_13] : memref<10x30xf32, #tpu.memory_space<vmem>>, vector<10x30xf32>
    %cst_14 = arith.constant dense<0.000000e+00> : vector<10x8xf32>
    %16 = tpu.matmul %15, %14, %cst_14 {dimension_numbers = #tpu.dot_dimension_numbers<[1], [0], [0], [1], [0, 0, 1, 1], [], []>} : vector<10x30xf32>, vector<30x8xf32>, vector<10x8xf32> -> vector<10x8xf32>
    %c0_15 = arith.constant 0 : index
    %c0_16 = arith.constant 0 : index
    %17 = vector.load %arg7[%c0_15, %c0_16] : memref<10x1xf32, #tpu.memory_space<vmem>>, vector<10x1xf32>
    %18 = vector.broadcast %17 : vector<10x1xf32> to vector<10x8xf32>
    %19 = arith.addf %16, %18 : vector<10x8xf32>
    %cst_17 = arith.constant 0.000000e+00 : f32
    %20 = vector.broadcast %cst_17 : f32 to vector<10x8xf32>
    %21 = arith.maximumf %19, %20 : vector<10x8xf32>
    %c0_18 = arith.constant 0 : index
    %c0_19 = arith.constant 0 : index
    %22 = vector.load %arg8[%c0_18, %c0_19] : memref<2x10xf32, #tpu.memory_space<vmem>>, vector<2x10xf32>
    %cst_20 = arith.constant dense<0.000000e+00> : vector<2x8xf32>
    %23 = tpu.matmul %22, %21, %cst_20 {dimension_numbers = #tpu.dot_dimension_numbers<[1], [0], [0], [1], [0, 0, 1, 1], [], []>} : vector<2x10xf32>, vector<10x8xf32>, vector<2x8xf32> -> vector<2x8xf32>
    %c0_21 = arith.constant 0 : index
    %c0_22 = arith.constant 0 : index
    %24 = vector.load %arg9[%c0_21, %c0_22] : memref<2x1xf32, #tpu.memory_space<vmem>>, vector<2x1xf32>
    %25 = vector.broadcast %24 : vector<2x1xf32> to vector<2x8xf32>
    %26 = arith.addf %23, %25 : vector<2x8xf32>
    %c0_23 = arith.constant 0 : index
    %c0_24 = arith.constant 0 : index
    %27 = vector.load %arg10[%c0_23, %c0_24] : memref<2x8xf32, #tpu.memory_space<vmem>>, vector<2x8xf32>
    tpu.vector_store %arg10[%c0_23, %c0_24], %26 {strides = array<i32>} : memref<2x8xf32, #tpu.memory_space<vmem>>, vector<2x8xf32>,
    return
  }
  func.func @transform_0(%arg0: i32) -> (i32, i32) {
    %c0_i32 = arith.constant 0 : i32
    %c0_i32_0 = arith.constant 0 : i32
    return %arg0, %c0_i32 : i32, i32
  }
  func.func @transform_1(%arg0: i32) -> (i32, i32) {
    %c0_i32 = arith.constant 0 : i32
    %c0_i32_0 = arith.constant 0 : i32
    %c0_i32_1 = arith.constant 0 : i32
    return %c0_i32, %c0_i32_0 : i32, i32
  }
  func.func @transform_2(%arg0: i32) -> (i32, i32) {
    %c0_i32 = arith.constant 0 : i32
    %c0_i32_0 = arith.constant 0 : i32
    %c0_i32_1 = arith.constant 0 : i32
    return %c0_i32, %c0_i32_0 : i32, i32
  }
  func.func @transform_3(%arg0: i32) -> (i32, i32) {
    %c0_i32 = arith.constant 0 : i32
    %c0_i32_0 = arith.constant 0 : i32
    %c0_i32_1 = arith.constant 0 : i32
    return %c0_i32, %c0_i32_0 : i32, i32
  }
  func.func @transform_4(%arg0: i32) -> (i32, i32) {
    %c0_i32 = arith.constant 0 : i32
    %c0_i32_0 = arith.constant 0 : i32
    %c0_i32_1 = arith.constant 0 : i32
    return %c0_i32, %c0_i32_0 : i32, i32
  }
  func.func @transform_5(%arg0: i32) -> (i32, i32) {
    %c0_i32 = arith.constant 0 : i32
    %c0_i32_0 = arith.constant 0 : i32
    %c0_i32_1 = arith.constant 0 : i32
    return %c0_i32, %c0_i32_0 : i32, i32
  }
  func.func @transform_6(%arg0: i32) -> (i32, i32) {
    %c0_i32 = arith.constant 0 : i32
    %c0_i32_0 = arith.constant 0 : i32
    %c0_i32_1 = arith.constant 0 : i32
    return %c0_i32, %c0_i32_0 : i32, i32
  }
  func.func @transform_7(%arg0: i32) -> (i32, i32) {
    %c0_i32 = arith.constant 0 : i32
    %c0_i32_0 = arith.constant 0 : i32
    %c0_i32_1 = arith.constant 0 : i32
    return %c0_i32, %c0_i32_0 : i32, i32
  }
  func.func @transform_8(%arg0: i32) -> (i32, i32) {
    %c0_i32 = arith.constant 0 : i32
    %c0_i32_0 = arith.constant 0 : i32
    %c0_i32_1 = arith.constant 0 : i32
    return %c0_i32, %c0_i32_0 : i32, i32
  }
  func.func @transform_9(%arg0: i32) -> (i32, i32) {
    %c0_i32 = arith.constant 0 : i32
    %c0_i32_0 = arith.constant 0 : i32
    return %c0_i32, %arg0 : i32, i32
  }
}

</mosaic_0001>

<bundles_post_ra>
// kernel: mlp_forward.1
= control target key start
LH: loop header
LB: loop body
LE: loop exit
PB: predicated region body
PF: predicated region fallthrough
CT: control target
= control target key end

     0   :  { %vm55_vm0 = vcmask 56320   ;;  %v591_v1 = vmov 0.0   ;;  %vm592_vm1 = vmmov 0   ;;  %v593_v4 = vmov 0   ;;  %s732_s0 = inlined_call_operand.vmem [shape: f32[8,7], index: 0, kind: input, shape index: {}]   ;;  %s733_s1 = inlined_call_operand.vmem [shape: f32[20,7], index: 1, kind: input, shape index: {}]   ;;  %s734_s2 = inlined_call_operand.vmem [shape: f32[20,1], index: 2, kind: input, shape index: {}]   ;;  %s735_s3 = inlined_call_operand.vmem [shape: f32[30,20], index: 3, kind: input, shape index: {}]   ;;  %s736_s4 = inlined_call_operand.vmem [shape: f32[30,1], index: 4, kind: input, shape index: {}]   ;;  %s737_s5 = inlined_call_operand.vmem [shape: f32[10,30], index: 5, kind: input, shape index: {}]   ;;  %s738_s6 = inlined_call_operand.vmem [shape: f32[10,1], index: 6, kind: input, shape index: {}]   ;;  %s739_s7 = inlined_call_operand.vmem [shape: f32[2,10], index: 7, kind: input, shape index: {}]   ;;  %s740_s8 = inlined_call_operand.vmem [shape: f32[2,1], index: 8, kind: input, shape index: {}]   ;;  %s741_s9 = inlined_call_operand.hbm [shape: f32[2,8], index: 9, kind: output, shape index: {}]  }
   0x1   :  { %v33_v0 = vld [vmem:[%s732_s0] sm:$0xff]  ;;  %522 = vmatprep.subr.mxu0 %v591_v1  ;;  %524 = vmatprep.mubr.msk.f32.mxu0 %vm592_vm1, %v591_v1  ;;  %v39_v2 = vld [vmem:[%s734_s2 + $0x10] sm:$0xf]  ;;  %v38_v6 = vld [vmem:[%s734_s2 + $0x8] sm:$0xff] }
   0x2   :  { %523 = vmatpush3.xpose.msk.msra.mxu0 %vm55_vm0, %v33_v0  ;;  %v34_v3 = vld [vmem:[%s733_s1] sm:$0xff]  ;;  %567 = vset.pattern.permute.xlu0 %v593_v4 }
   0x3   :  { %v37_v5 = vld [vmem:[%s734_s2] sm:$0xff]  ;;  %52 = vperm.xlu0 %567, %v39_v2   ;;  %568 = vset.pattern.permute.xlu1 %v593_v4 }
   0x4   :  { %42 = vperm.xlu1 %568, %v37_v5   ;;  %556 = vmatprep.subr.mxu0 %v591_v1 }
   0x5   :  { %14 = vsyncpa [#allocation3], 0  ;;  %525 = vmatmul.mubr.msk.f32.vlgmr.msra.gmra.mxu0 %vm55_vm0, %v34_v3  ;;  %v158_v7 = vld [vmem:[%s736_s4 + $0x18] sm:$0x3f]  ;;  %v35_v8 = vld [vmem:[%s733_s1 + $0x8] sm:$0xff]  ;;  %vm179_vm2 = vcmask 162816  }
   0x6   :  { %527 = vmatprep.mubr.msk.f32.mxu0 %vm592_vm1, %v591_v1  ;;  %v157_v9 = vld [vmem:[%s736_s4 + $0x10] sm:$0xff]  ;;  %v156_v10 = vld [vmem:[%s736_s4 + $0x8] sm:$0xff]  ;;  %v155_v12 = vld [vmem:[%s736_s4] sm:$0xff]  ;;  %vm192_vm3 = vcmask 1043456   ;;  %vm299_vm4 = vcmask 244736   ;;  %vm306_vm5 = vcmask 1045504  }
   0x7   :  { %47 = vperm.xlu0 %567, %v38_v6   ;;  %v36_v11 = vld [vmem:[%s733_s1 + $0x10] sm:$0xf]  ;;  %v288_v13 = vld [vmem:[%s738_s6 + $0x8] sm:$0x3]  ;;  %v287_v14 = vld [vmem:[%s738_s6] sm:$0xff]  ;;  %vm398_vm6 = vcmask 1041408  }
   0x8   :  { %176 = vperm.xlu1 %568, %v158_v7   ;;  %v388_v15 = vld [vmem:[%s740_s8] sm:$0x3]  ;;  %v152_v32 = vld [vmem:[%s735_s3 + $0x8] sm:$0xff]  ;;  %v153_v33 = vld [vmem:[%s735_s3 + $0x10] sm:$0xff]  ;;  %vm394_vm7 = vcmask 80896   ;;  %vm472_vm8 = vcmask 58368  }
   0x9   :  { %528 = vmatmul.mubr.msk.f32.gmra.mxu0 %vm55_vm0, %v35_v8  ;;  %v151_v16 = vld [vmem:[%s735_s3] sm:$0xff]  ;;  %v154_v34 = vld [vmem:[%s735_s3 + $0x18] sm:$0x3f]  ;;  %v286_v52 = vld [vmem:[%s737_s5 + $0x8] sm:$0x3] }
   0xa   :  { %530 = vmatprep.mubr.msk.f32.mxu0 %vm592_vm1, %v591_v1  ;;  %539 = vmatprep.mubr.msk.f32.mxu1 %vm179_vm2, %v151_v16  ;;  %v285_v35 = vld [vmem:[%s737_s5] sm:$0xff]  ;;  %s594_s5 = smov [#allocation2]  }
   0xb   :  { %171 = vperm.xlu0 %567, %v157_v9   ;;  %v387_v61 = vld [vmem:[%s739_s7] sm:$0x3]  ;;  %s480_s22 = sshll.u32 %s594_s5, 4  ;;  %s481_s22 = int_to_ptr.vmem [resolvable:$true] %s480_s22 }
   0xc   :  { %166 = vperm.xlu1 %568, %v156_v10   ;;  %s569_s2 = scalar_lea.vmem %s481_s22, 32  ;;  %p574_p1 = scmp.lt.s32.totalorder %s481_s22, %s481_s22 }
   0xd   :  { %531 = vmatmul.mubr.msk.f32.gmra.mxu0 %vm55_vm0, %v36_v11  ;;  %p570_p0 = scmp.ne.s32.totalorder %s481_s22, %s569_s2  ;;  %p575_p2 = scmp.lt.s32.totalorder %s569_s2, %s569_s2 }
   0xe   :  { %560 = vmatprep.mubr.msk.f32.mxu0 %vm592_vm1, %v591_v1 }
   0xf   :  { %161 = vperm.xlu0 %567, %v155_v12   ;;  %p576_p3 = por %p575_p2, %p574_p1 }
  0x10   :  { %296 = vperm.xlu1 %568, %v288_v13  }
  0x11   :  { %p577_p4 = pnand %p576_p3, %p570_p0 }
  0x13   :  { %291 = vperm.xlu0 %567, %v287_v14  }
  0x14   :  { %391 = vperm.xlu1 %568, %v388_v15  }
  0x7e   :  { %v53_v18 = vpop.permute.xlu0 %52 }
  0x7f   :  { %v43_v26 = vpop.permute.xlu1 %42 }
  0x82   :  { %v48_v22 = vpop.permute.xlu0 %47 }
  0x83   :  { %v177_v36 = vpop.permute.xlu1 %176 }
  0x86   :  { %v172_v38 = vpop.permute.xlu0 %171 }
  0x87   :  { %v167_v42 = vpop.permute.xlu1 %166 }
  0x8a   :  { %v162_v47 = vpop.permute.xlu0 %161 }
  0x8b   :  { %v297_v53 = vpop.permute.xlu1 %296 }
  0x8e   :  { %v292_v56 = vpop.permute.xlu0 %291 }
  0x8f   :  { %v392_v62 = vpop.permute.xlu1 %391 }
  0xc5   :  { %v134_v17 = vpop.f32.mrf.mxu0 }
  0xc6   :  { %v135_v28 = vadd.f32 %v134_v17, %v43_v26 }
  0xc7   :  { %v526_v19 = vpop.f32.mrf.mxu0 }
  0xc8   :  { %v148_v31 = vmax.f32 %v135_v28, 0.0 }
  0xc9   :  { %v139_v20 = vpop.f32.mrf.mxu0 }
  0xca   :  { %v140_v24 = vadd.f32 %v139_v20, %v48_v22 }
  0xcb   :  { %v529_v21 = vpop.f32.mrf.mxu0 }
  0xcc   :  { %v149_v30 = vmax.f32 %v140_v24, 0.0 }
  0xcd   :  { %v144_v23 = vpop.f32.mrf.mxu0 }
  0xce   :  { %v145_v25 = vadd.f32 %v144_v23, %v53_v18 }
  0xcf   :  { %v532_v27 = vpop.f32.mrf.mxu0 }
  0xd0   :  { %v150_v29 = vmax.f32 %v145_v25, 0.0 }
  0xd2   :  { %533 = vmatprep.subr.msk.mxu1 %vm192_vm3, %v150_v29 }
  0xd3   :  { %534 = vmatpush3.msk.msra.mxu1 %vm192_vm3, %v150_v29 }
  0xd4   :  { %535 = vmatprep.subr.mxu1 %v149_v30 }
  0xd5   :  { %536 = vmatpush3.msra.mxu1 %v149_v30 }
  0xd6   :  { %537 = vmatprep.subr.mxu1 %v148_v31 }
  0xd7   :  { %538 = vmatpush3.msra.mxu1 %v148_v31 }
  0xd8   :  { %540 = vmatmul.mubr.msk.f32.vlgmr.msra.gmra.mxu1 %vm179_vm2, %v152_v32 }
  0xd9   :  { %542 = vmatprep.mubr.msk.f32.mxu1 %vm179_vm2, %v153_v33 }
  0xdc   :  { %543 = vmatmul.mubr.msk.f32.gmra.mxu1 %vm179_vm2, %v154_v34 }
  0xdd   :  { %553 = vmatprep.mubr.msk.f32.mxu1 %vm299_vm4, %v285_v35 }
 0x198   :  { %v541_v37 = vpop.f32.mrf.mxu1 }
 0x199   :  { %v268_v44 = vadd.f32 %v541_v37, %v167_v42 }
 0x19a   :  { %v262_v39 = vpop.f32.mrf.mxu1 }
 0x19b   :  { %v263_v48 = vadd.f32 %v262_v39, %v162_v47  ;;  %v282_v50 = vmax.f32 %v268_v44, 0.0 }
 0x19c   :  { %v544_v40 = vpop.f32.mrf.mxu1 }
 0x19d   :  { %v278_v41 = vadd.f32 %v544_v40, %v177_v36  ;;  %v281_v51 = vmax.f32 %v263_v48, 0.0 }
 0x19e   :  { %v272_v43 = vpop.f32.mrf.mxu1 }
 0x19f   :  { %v284_v45 = vmax.f32 %v278_v41, 0.0  ;;  %v273_v46 = vadd.f32 %v272_v43, %v172_v38 }
 0x1a1   :  { %v283_v49 = vmax.f32 %v273_v46, 0.0  ;;  %545 = vmatprep.subr.msk.mxu1 %vm306_vm5, %v284_v45 }
 0x1a2   :  { %546 = vmatpush3.msk.msra.mxu1 %vm306_vm5, %v284_v45 }
 0x1a3   :  { %547 = vmatprep.subr.mxu1 %v283_v49 }
 0x1a4   :  { %548 = vmatpush3.msra.mxu1 %v283_v49 }
 0x1a5   :  { %549 = vmatprep.subr.mxu1 %v282_v50 }
 0x1a6   :  { %550 = vmatpush3.msra.mxu1 %v282_v50 }
 0x1a7   :  { %551 = vmatprep.subr.mxu1 %v281_v51 }
 0x1a8   :  { %552 = vmatpush3.msra.mxu1 %v281_v51 }
 0x1a9   :  { %554 = vmatmul.mubr.msk.f32.vlgmr.msra.gmra.mxu1 %vm299_vm4, %v286_v52 }
 0x269   :  { %v555_v54 = vpop.f32.mrf.mxu1 }
 0x26a   :  { %v382_v55 = vadd.f32 %v555_v54, %v297_v53 }
 0x26b   :  { %v376_v57 = vpop.f32.mrf.mxu1 }
 0x26c   :  { %v386_v58 = vmax.f32 %v382_v55, 0.0  ;;  %v377_v59 = vadd.f32 %v376_v57, %v292_v56 }
 0x26e   :  { %v385_v60 = vmax.f32 %v377_v59, 0.0  ;;  %557 = vmatpush3.msk.msra.mxu0 %vm398_vm6, %v386_v58 }
 0x26f   :  { %558 = vmatprep.subr.mxu0 %v591_v1 }
 0x270   :  { %559 = vmatpush3.msra.mxu0 %v385_v60 }
 0x271   :  { %561 = vmatmul.mubr.msk.f32.vlgmr.msra.gmra.mxu0 %vm394_vm7, %v387_v61 }
 0x331   :  { %v468_v63 = vpop.f32.mrf.mxu0 }
 0x332   :  { %v469_v0 = vadd.f32 %v468_v63, %v392_v62 }
 0x333   :  { %v562_v2 = vpop.f32.mrf.mxu0 }
 0x334   :  { %473 = vst.msk [vmem:[#allocation2] sm:$0x3] %vm472_vm8, %v469_v0 }
 0x335   :  { %580 = shalt.err (!%p577_p4)
}
 0x336   :  { %483 = dma.vmem_to_hbm [thread:$0]  %s481_s22, 32, %s741_s9, [#allocation3]  }
 0x337   :  { %589 = dma.done.wait [#allocation3], 32  }
 0x338   :  { %590 = vsyncadd [#allocation3], 4294967264 }
 0x339   :  { %487 = vsyncpa [#allocation3], 1 }

</bundles_post_ra>
